<compile_context>
chip_gen: v7x
topology: tpu7x:2x2x1
jax: 0.10.0
libtpu: 0.0.40
codegen_flags: <defaults>
</compile_context>

<pallas_src>
import jax
import jax.numpy as jnp
from jax.experimental import pallas as pl
from jax.experimental.pallas import tpu as pltpu

LANE = 128
SUBLANE = 8
MAX_BATCH_TILE = 512  # review: 512-1024 amortizes ~0.35us/grid-step overhead


def _cdiv(a, b):
    return -(-a // b)


def _round_up(n, m):
    return _cdiv(n, m) * m


def _choose_batch_tiling(batch):
    """Pick (tile_rows, padded_batch) for the batch grid axis."""
    n_tiles = max(1, _cdiv(batch, MAX_BATCH_TILE))
    # v7x megacore: ("parallel",) only helps if there are >=2 grid steps.
    if n_tiles == 1 and batch > 2 * LANE:
        n_tiles = 2
    per_tile = _cdiv(batch, n_tiles)
    tb = _round_up(per_tile, LANE)            # lane-friendly MXU passes
    if tb * n_tiles - batch >= max(SUBLANE, tb // 2):
        tb = _round_up(per_tile, SUBLANE)     # avoid ~2x padded dead work
    return tb, tb * n_tiles


def actor_kernel(x_ref, w1_ref, b1_ref, w2_ref, b2_ref, w3_ref, b3_ref, o_ref):
    # fc1 + ReLU: bf16 operands on the MXU, f32 accumulation; bias + relu in
    # f32, live activation kept bf16 (halves vst/spill traffic).
    h1 = jnp.dot(x_ref[...], w1_ref[...], preferred_element_type=jnp.float32)
    h1 = jnp.maximum(h1 + b1_ref[...], 0.0).astype(jnp.bfloat16)
    # fc2 + ReLU
    h2 = jnp.dot(h1, w2_ref[...], preferred_element_type=jnp.float32)
    h2 = jnp.maximum(h2 + b2_ref[...], 0.0).astype(jnp.bfloat16)
    # fc3 + tanh (EUP); bf16 store halves the padded-output HBM writeback.
    h3 = jnp.dot(h2, w3_ref[...], preferred_element_type=jnp.float32)
    o_ref[...] = jnp.tanh(h3 + b3_ref[...]).astype(o_ref.dtype)


def actor_forward(x, kernel_params, nb_actions):
    """x: (B, nb_states+1) f32. kernel_params: padded bf16 weights / f32 biases."""
    w1, b1, w2, b2, w3, b3 = (
        kernel_params[k] for k in ("w1", "b1", "w2", "b2", "w3", "b3"))
    B, d_in = x.shape
    assert d_in == w1.shape[0]
    ap = w3.shape[1]  # padded action dim (multiple of 128 lanes)

    tb, b_pad = _choose_batch_tiling(B)
    # Pre-cast x to bf16 in the wrapper: halves x DMA, removes the in-kernel
    # cast on lane-sparse vregs.
    xb = x.astype(jnp.bfloat16)
    if b_pad != B:
        xb = jnp.pad(xb, ((0, b_pad - B), (0, 0)))

    def resident(shape):
        # Grid-invariant index map -> stays VMEM-resident across grid steps.
        return pl.BlockSpec(shape, lambda i: tuple(0 for _ in shape))

    out = pl.pallas_call(
        actor_kernel,
        out_shape=jax.ShapeDtypeStruct((b_pad, ap), jnp.bfloat16),
        grid=(b_pad // tb,),
        in_specs=[
            pl.BlockSpec((tb, d_in), lambda i: (i, 0)),   # x: tiled over batch
            resident(w1.shape), resident(b1.shape),
            resident(w2.shape), resident(b2.shape),
            resident(w3.shape), resident(b3.shape),
        ],
        out_specs=pl.BlockSpec((tb, ap), lambda i: (i, 0)),
        compiler_params=pltpu.CompilerParams(
            dimension_semantics=("parallel",)),           # shard batch across TCs
    )(xb, w1, b1, w2, b2, w3, b3)
    return out[:B, :nb_actions].astype(jnp.float32)


def fanin_init(key, shape):
    # uniform(-1/sqrt(fan_in), 1/sqrt(fan_in)); weights stored (in, out).
    v = 1.0 / (shape[0] ** 0.5)
    return jax.random.uniform(key, shape, jnp.float32, minval=-v, maxval=v)


def init_actor_params(key, nb_states, nb_actions, hidden1=400, hidden2=300,
                      init_w=0.003):
    """Full-precision, unpadded parameters (matches the PyTorch Actor init)."""
    d_in = nb_states + 1
    k = jax.random.split(key, 6)
    return {
        "w1": fanin_init(k[0], (d_in, hidden1)),
        "w2": fanin_init(k[1], (hidden1, hidden2)),
        "w3": jax.random.uniform(k[2], (hidden2, nb_actions), jnp.float32,
                                 minval=-init_w, maxval=init_w),
        # PyTorch Linear default bias init: uniform(-1/sqrt(fan_in), 1/sqrt(fan_in))
        "b1": jax.random.uniform(k[3], (hidden1,), jnp.float32,
                                 minval=-1.0 / d_in ** 0.5, maxval=1.0 / d_in ** 0.5),
        "b2": jax.random.uniform(k[4], (hidden2,), jnp.float32,
                                 minval=-1.0 / hidden1 ** 0.5, maxval=1.0 / hidden1 ** 0.5),
        "b3": jax.random.uniform(k[5], (nb_actions,), jnp.float32,
                                 minval=-1.0 / hidden2 ** 0.5, maxval=1.0 / hidden2 ** 0.5),
    }


def pack_params_for_kernel(params_f32):
    """Zero-pad to lane multiples (exact math; padded cols give relu/tanh(0)=0,
    sliced away in the wrapper) and quantize weights to bf16 for the MXU."""
    w1, w2, w3 = params_f32["w1"], params_f32["w2"], params_f32["w3"]
    b1, b2, b3 = params_f32["b1"], params_f32["b2"], params_f32["b3"]
    d_in, h1 = w1.shape
    h2, na = w2.shape[1], w3.shape[1]
    h1p, h2p, ap = _round_up(h1, LANE), _round_up(h2, LANE), _round_up(na, LANE)

    def pad2(a, rows, cols):
        return jnp.pad(a, ((0, rows - a.shape[0]), (0, cols - a.shape[1])))

    return {
        "w1": pad2(w1, d_in, h1p).astype(jnp.bfloat16),
        "w2": pad2(w2, h1p, h2p).astype(jnp.bfloat16),
        "w3": pad2(w3, h2p, ap).astype(jnp.bfloat16),
        "b1": pad2(b1.reshape(1, -1), 1, h1p),
        "b2": pad2(b2.reshape(1, -1), 1, h2p),
        "b3": pad2(b3.reshape(1, -1), 1, ap),
    }


def reference_forward_bf16path(x, kernel_params, nb_actions):
    """Plain-JAX reference replicating the kernel's bf16/f32 numerics."""
    p = kernel_params
    xb = x.astype(jnp.bfloat16)
    h1 = jnp.dot(xb, p["w1"], preferred_element_type=jnp.float32) + p["b1"]
    h1 = jnp.maximum(h1, 0.0).astype(jnp.bfloat16)
    h2 = jnp.dot(h1, p["w2"], preferred_element_type=jnp.float32) + p["b2"]
    h2 = jnp.maximum(h2, 0.0).astype(jnp.bfloat16)
    h3 = jnp.dot(h2, p["w3"], preferred_element_type=jnp.float32) + p["b3"]
    return jnp.tanh(h3).astype(jnp.bfloat16).astype(jnp.float32)[:, :nb_actions]


def reference_forward_f32(x, params_f32):
    """True f32 forward pass (PyTorch-Actor-equivalent numerics)."""
    h1 = jnp.maximum(x @ params_f32["w1"] + params_f32["b1"], 0.0)
    h2 = jnp.maximum(h1 @ params_f32["w2"] + params_f32["b2"], 0.0)
    return jnp.tanh(h2 @ params_f32["w3"] + params_f32["b3"])


if __name__ == "__main__":
    key = jax.random.PRNGKey(0)
    nb_states, nb_actions = 7, 4          # input dim = nb_states + 1 = 8
    batch = 2
    kx, kp = jax.random.split(key)

    params_f32 = init_actor_params(kp, nb_states, nb_actions)
    kernel_params = pack_params_for_kernel(params_f32)
    x = jax.random.normal(kx, (batch, nb_states + 1), jnp.float32)

    out = actor_forward(x, kernel_params, nb_actions)
    jax.block_until_ready(out)
    assert out.shape == (batch, nb_actions)

    # Tight check against the identical bf16-path reference.
    ref_bf16 = reference_forward_bf16path(x, kernel_params, nb_actions)
    err_bf16 = float(jnp.max(jnp.abs(out - ref_bf16)))
    assert jnp.allclose(out, ref_bf16, atol=4e-3, rtol=0), (
        f"bf16-path max abs err {err_bf16}")

    # Loose fidelity check against the true f32 PyTorch-equivalent forward.
    ref_f32 = reference_forward_f32(x, params_f32)
    err_f32 = float(jnp.max(jnp.abs(out - ref_f32)))
    assert jnp.allclose(out, ref_f32, atol=5e-2, rtol=0), (
        f"f32-reference max abs err {err_f32}")

    print("KERNEL_OK")
</pallas_src>

<mosaic_0001>
module attributes {stable_mosaic.version = 11 : i64} {
  func.func @actor_kernel(%arg0: i32, %arg1: memref<8x8xbf16, #tpu.memory_space<vmem>>, %arg2: memref<8x512xbf16, #tpu.memory_space<vmem>>, %arg3: memref<1x512xf32, #tpu.memory_space<vmem>>, %arg4: memref<512x384xbf16, #tpu.memory_space<vmem>>, %arg5: memref<1x384xf32, #tpu.memory_space<vmem>>, %arg6: memref<384x128xbf16, #tpu.memory_space<vmem>>, %arg7: memref<1x128xf32, #tpu.memory_space<vmem>>, %arg8: memref<8x128xbf16, #tpu.memory_space<vmem>>) attributes {dimension_semantics = [#tpu.dimension_semantics<parallel>], iteration_bounds = array<i64: 1>, scalar_prefetch = 0 : i64, scratch_operands = 0 : i64, tpu.core_type = #tpu.core_type<tc>, window_params = [{transform_indices = @transform_0, window_bounds = array<i64: 8, 8>}, {pipeline_mode = #tpu.pipeline_mode<synchronous>, transform_indices = @transform_1, window_bounds = array<i64: 8, 512>}, {pipeline_mode = #tpu.pipeline_mode<synchronous>, transform_indices = @transform_2, window_bounds = array<i64: 1, 512>}, {pipeline_mode = #tpu.pipeline_mode<synchronous>, transform_indices = @transform_3, window_bounds = array<i64: 512, 384>}, {pipeline_mode = #tpu.pipeline_mode<synchronous>, transform_indices = @transform_4, window_bounds = array<i64: 1, 384>}, {pipeline_mode = #tpu.pipeline_mode<synchronous>, transform_indices = @transform_5, window_bounds = array<i64: 384, 128>}, {pipeline_mode = #tpu.pipeline_mode<synchronous>, transform_indices = @transform_6, window_bounds = array<i64: 1, 128>}, {transform_indices = @transform_7, window_bounds = array<i64: 8, 128>}]} {
    %c0 = arith.constant 0 : index
    %c0_0 = arith.constant 0 : index
    %0 = vector.load %arg1[%c0, %c0_0] : memref<8x8xbf16, #tpu.memory_space<vmem>>, vector<8x8xbf16>
    %c0_1 = arith.constant 0 : index
    %c0_2 = arith.constant 0 : index
    %1 = vector.load %arg2[%c0_1, %c0_2] : memref<8x512xbf16, #tpu.memory_space<vmem>>, vector<8x512xbf16>
    %cst = arith.constant dense<0.000000e+00> : vector<8x512xf32>
    %2 = tpu.matmul %0, %1, %cst {dimension_numbers = #tpu.dot_dimension_numbers<[1], [0], [0], [1], [0, 0, 1, 1], [], []>} : vector<8x8xbf16>, vector<8x512xbf16>, vector<8x512xf32> -> vector<8x512xf32>
    %c0_3 = arith.constant 0 : index
    %c0_4 = arith.constant 0 : index
    %3 = vector.load %arg3[%c0_3, %c0_4] : memref<1x512xf32, #tpu.memory_space<vmem>>, vector<1x512xf32>
    %4 = vector.broadcast %3 : vector<1x512xf32> to vector<8x512xf32>
    %5 = arith.addf %2, %4 : vector<8x512xf32>
    %cst_5 = arith.constant 0.000000e+00 : f32
    %6 = vector.broadcast %cst_5 : f32 to vector<8x512xf32>
    %7 = arith.maximumf %5, %6 : vector<8x512xf32>
    %8 = arith.truncf %7 : vector<8x512xf32> to vector<8x512xbf16>
    %c0_6 = arith.constant 0 : index
    %c0_7 = arith.constant 0 : index
    %9 = vector.load %arg4[%c0_6, %c0_7] : memref<512x384xbf16, #tpu.memory_space<vmem>>, vector<512x384xbf16>
    %cst_8 = arith.constant dense<0.000000e+00> : vector<8x384xf32>
    %10 = tpu.matmul %8, %9, %cst_8 {dimension_numbers = #tpu.dot_dimension_numbers<[1], [0], [0], [1], [0, 0, 1, 1], [], []>} : vector<8x512xbf16>, vector<512x384xbf16>, vector<8x384xf32> -> vector<8x384xf32>
    %c0_9 = arith.constant 0 : index
    %c0_10 = arith.constant 0 : index
    %11 = vector.load %arg5[%c0_9, %c0_10] : memref<1x384xf32, #tpu.memory_space<vmem>>, vector<1x384xf32>
    %12 = vector.broadcast %11 : vector<1x384xf32> to vector<8x384xf32>
    %13 = arith.addf %10, %12 : vector<8x384xf32>
    %cst_11 = arith.constant 0.000000e+00 : f32
    %14 = vector.broadcast %cst_11 : f32 to vector<8x384xf32>
    %15 = arith.maximumf %13, %14 : vector<8x384xf32>
    %16 = arith.truncf %15 : vector<8x384xf32> to vector<8x384xbf16>
    %c0_12 = arith.constant 0 : index
    %c0_13 = arith.constant 0 : index
    %17 = vector.load %arg6[%c0_12, %c0_13] : memref<384x128xbf16, #tpu.memory_space<vmem>>, vector<384x128xbf16>
    %cst_14 = arith.constant dense<0.000000e+00> : vector<8x128xf32>
    %18 = tpu.matmul %16, %17, %cst_14 {dimension_numbers = #tpu.dot_dimension_numbers<[1], [0], [0], [1], [0, 0, 1, 1], [], []>} : vector<8x384xbf16>, vector<384x128xbf16>, vector<8x128xf32> -> vector<8x128xf32>
    %c0_15 = arith.constant 0 : index
    %c0_16 = arith.constant 0 : index
    %19 = vector.load %arg7[%c0_15, %c0_16] : memref<1x128xf32, #tpu.memory_space<vmem>>, vector<1x128xf32>
    %20 = vector.broadcast %19 : vector<1x128xf32> to vector<8x128xf32>
    %21 = arith.addf %18, %20 : vector<8x128xf32>
    %22 = math.tanh %21 : vector<8x128xf32>
    %23 = arith.truncf %22 : vector<8x128xf32> to vector<8x128xbf16>
    %c0_17 = arith.constant 0 : index
    %c0_18 = arith.constant 0 : index
    %24 = vector.load %arg8[%c0_17, %c0_18] : memref<8x128xbf16, #tpu.memory_space<vmem>>, vector<8x128xbf16>
    tpu.vector_store %arg8[%c0_17, %c0_18], %23 {strides = array<i32>} : memref<8x128xbf16, #tpu.memory_space<vmem>>, vector<8x128xbf16>,
    return
  }
  func.func @transform_0(%arg0: i32) -> (i32, i32) {
    %c0_i32 = arith.constant 0 : i32
    %c0_i32_0 = arith.constant 0 : i32
    return %arg0, %c0_i32 : i32, i32
  }
  func.func @transform_1(%arg0: i32) -> (i32, i32) {
    %c0_i32 = arith.constant 0 : i32
    %c0_i32_0 = arith.constant 0 : i32
    %c0_i32_1 = arith.constant 0 : i32
    return %c0_i32, %c0_i32_0 : i32, i32
  }
  func.func @transform_2(%arg0: i32) -> (i32, i32) {
    %c0_i32 = arith.constant 0 : i32
    %c0_i32_0 = arith.constant 0 : i32
    %c0_i32_1 = arith.constant 0 : i32
    return %c0_i32, %c0_i32_0 : i32, i32
  }
  func.func @transform_3(%arg0: i32) -> (i32, i32) {
    %c0_i32 = arith.constant 0 : i32
    %c0_i32_0 = arith.constant 0 : i32
    %c0_i32_1 = arith.constant 0 : i32
    return %c0_i32, %c0_i32_0 : i32, i32
  }
  func.func @transform_4(%arg0: i32) -> (i32, i32) {
    %c0_i32 = arith.constant 0 : i32
    %c0_i32_0 = arith.constant 0 : i32
    %c0_i32_1 = arith.constant 0 : i32
    return %c0_i32, %c0_i32_0 : i32, i32
  }
  func.func @transform_5(%arg0: i32) -> (i32, i32) {
    %c0_i32 = arith.constant 0 : i32
    %c0_i32_0 = arith.constant 0 : i32
    %c0_i32_1 = arith.constant 0 : i32
    return %c0_i32, %c0_i32_0 : i32, i32
  }
  func.func @transform_6(%arg0: i32) -> (i32, i32) {
    %c0_i32 = arith.constant 0 : i32
    %c0_i32_0 = arith.constant 0 : i32
    %c0_i32_1 = arith.constant 0 : i32
    return %c0_i32, %c0_i32_0 : i32, i32
  }
  func.func @transform_7(%arg0: i32) -> (i32, i32) {
    %c0_i32 = arith.constant 0 : i32
    %c0_i32_0 = arith.constant 0 : i32
    return %arg0, %c0_i32 : i32, i32
  }
}

</mosaic_0001>

<bundles_post_ra>
// kernel: tpu_custom_call.1
= control target key start
LH: loop header
LB: loop body
LE: loop exit
PB: predicated region body
PF: predicated region fallthrough
CT: control target
= control target key end

     0   :  { %12 = vsyncpa [#allocation3], 0  ;;  %s2011_s0 = inlined_call_operand.hbm [shape: bf16[8,8], index: 0, kind: input, shape index: {}]   ;;  %s2012_s1 = inlined_call_operand.hbm [shape: bf16[8,512], index: 1, kind: input, shape index: {}]   ;;  %s2013_s2 = inlined_call_operand.vmem [shape: f32[1,512], index: 2, kind: input, shape index: {}]   ;;  %s2014_s3 = inlined_call_operand.hbm [shape: bf16[512,384], index: 3, kind: input, shape index: {}]   ;;  %s2015_s4 = inlined_call_operand.vmem [shape: f32[1,384], index: 4, kind: input, shape index: {}]   ;;  %s2016_s5 = inlined_call_operand.hbm [shape: bf16[384,128], index: 5, kind: input, shape index: {}]   ;;  %s2017_s6 = inlined_call_operand.vmem [shape: f32[1,128], index: 6, kind: input, shape index: {}]   ;;  %s2018_s7 = inlined_call_operand.hbm [shape: bf16[8,128], index: 7, kind: output, shape index: {}]  }
   0x1   :  { %13 = vsyncpa [#allocation6], 0 }
   0x2   :  { %14 = vsyncpa [#allocation9], 0 }
   0x3   :  { %15 = vsyncpa [#allocation4], 0  ;;  %s1863_s24 = smov [#allocation5]   ;;  %s1864_s26 = smov [#allocation2]  }
   0x4   :  { %s32_s25 = sshll.u32 %s1863_s24, 4  ;;  %s22_s27 = sshll.u32 %s1864_s26, 4  ;;  %s33_s25 = int_to_ptr.vmem [resolvable:$true] %s32_s25  ;;  %s23_s27 = int_to_ptr.vmem [resolvable:$true] %s22_s27 }
   0x5   :  { %s1745_s30 = scalar_lea.hbm %s2012_s1, 256 }
   0x6   :  { %p1746_p0 = scmp.ne.s32.totalorder %s2012_s1, %s1745_s30  ;;  %p1749_p1 = scmp.lt.u32.totalorder %s1745_s30, %s2012_s1 }
   0x8   :  { %p1751_p2 = pnand %p1749_p1, %p1746_p0 }
   0xa   :  { %1754 = shalt.err (!%p1751_p2)
}
   0xb   :  { %s1755_s12 = scalar_lea.vmem %s33_s25, 256  ;;  %p1760_p4 = scmp.lt.s32.totalorder %s33_s25, %s33_s25 }
   0xc   :  { %p1756_p3 = scmp.ne.s32.totalorder %s33_s25, %s1755_s12  ;;  %p1761_p5 = scmp.lt.s32.totalorder %s1755_s12, %s1755_s12 }
   0xe   :  { %p1762_p6 = por %p1761_p5, %p1760_p4 }
  0x10   :  { %p1763_p7 = pnand %p1762_p6, %p1756_p3 }
  0x12   :  { %1766 = shalt.err (!%p1763_p7)
}
  0x13   :  { %35 = dma.hbm_to_vmem [thread:$0]  %s2012_s1, 256, %s33_s25, [#allocation6]  }
  0x14   :  { %s1767_s17 = scalar_lea.hbm %s2011_s0, 64 }
  0x15   :  { %p1768_p8 = scmp.ne.s32.totalorder %s2011_s0, %s1767_s17  ;;  %p1771_p9 = scmp.lt.u32.totalorder %s1767_s17, %s2011_s0 }
  0x17   :  { %p1773_p10 = pnand %p1771_p9, %p1768_p8 }
  0x19   :  { %1776 = shalt.err (!%p1773_p10)
}
  0x1a   :  { %s1777_s22 = scalar_lea.vmem %s23_s27, 64  ;;  %p1782_p12 = scmp.lt.s32.totalorder %s23_s27, %s23_s27 }
  0x1b   :  { %p1778_p11 = scmp.ne.s32.totalorder %s23_s27, %s1777_s22  ;;  %p1783_p13 = scmp.lt.s32.totalorder %s1777_s22, %s1777_s22 }
  0x1d   :  { %p1784_p0 = por %p1783_p13, %p1782_p12 }
  0x1f   :  { %p1785_p1 = pnand %p1784_p0, %p1778_p11 }
  0x21   :  { %1788 = shalt.err (!%p1785_p1)
}
  0x22   :  { %25 = dma.hbm_to_vmem [thread:$0]  %s2011_s0, 64, %s23_s27, [#allocation3]  }
  0x23   :  { %s1865_s24 = smov [#allocation7]   ;;  %s1789_s29 = scalar_lea.hbm %s2014_s3, 12288 }
  0x24   :  { %s43_s25 = sshll.u32 %s1865_s24, 4  ;;  %p1790_p2 = scmp.ne.s32.totalorder %s2014_s3, %s1789_s29  ;;  %s44_s25 = int_to_ptr.vmem [resolvable:$true] %s43_s25 }
  0x25   :  { %p1793_p3 = scmp.lt.u32.totalorder %s1789_s29, %s2014_s3 }
  0x27   :  { %p1795_p4 = pnand %p1793_p3, %p1790_p2 }
  0x29   :  { %1798 = shalt.err (!%p1795_p4)
}
  0x2a   :  { %s1799_s11 = scalar_lea.vmem %s44_s25, 12288  ;;  %p1804_p6 = scmp.lt.s32.totalorder %s44_s25, %s44_s25 }
  0x2b   :  { %p1800_p5 = scmp.ne.s32.totalorder %s44_s25, %s1799_s11  ;;  %p1805_p7 = scmp.lt.s32.totalorder %s1799_s11, %s1799_s11 }
  0x2d   :  { %p1806_p8 = por %p1805_p7, %p1804_p6 }
  0x2f   :  { %p1807_p9 = pnand %p1806_p8, %p1800_p5 }
  0x31   :  { %1810 = shalt.err (!%p1807_p9)
}
  0x32   :  { %s1866_s0 = smov 192   ;;  %s1867_s27 = smov 12  }
  0x33   :  { %49 = dma.hbm_to_vmem [thread:$0]  %s2014_s3, 12288, %s44_s25, [#allocation6], %s1866_s0, %s1866_s0, %s1867_s27  }
  0x34   :  { %s1868_s14 = smov [#allocation8]   ;;  %s1811_s18 = scalar_lea.hbm %s2016_s5, 3072 }
  0x35   :  { %s57_s15 = sshll.u32 %s1868_s14, 4  ;;  %p1812_p10 = scmp.ne.s32.totalorder %s2016_s5, %s1811_s18  ;;  %s58_s15 = int_to_ptr.vmem [resolvable:$true] %s57_s15 }
  0x36   :  { %p1815_p11 = scmp.lt.u32.totalorder %s1811_s18, %s2016_s5 }
  0x38   :  { %p1817_p12 = pnand %p1815_p11, %p1812_p10 }
  0x3a   :  { %1820 = shalt.err (!%p1817_p12)
}
  0x3b   :  { %s1821_s1 = scalar_lea.vmem %s58_s15, 3072  ;;  %p1826_p0 = scmp.lt.s32.totalorder %s58_s15, %s58_s15 }
  0x3c   :  { %p1822_p13 = scmp.ne.s32.totalorder %s58_s15, %s1821_s1  ;;  %p1827_p1 = scmp.lt.s32.totalorder %s1821_s1, %s1821_s1 }
  0x3e   :  { %p1828_p2 = por %p1827_p1, %p1826_p0 }
  0x40   :  { %p1829_p3 = pnand %p1828_p2, %p1822_p13 }
  0x42   :  { %1832 = shalt.err (!%p1829_p3)
}
  0x43   :  { %s1869_s3 = smov 64   ;;  %s1870_s23 = smov 4  }
  0x44   :  { %63 = dma.hbm_to_vmem [thread:$0]  %s2016_s5, 3072, %s58_s15, [#allocation9], %s1869_s3, %s1869_s3, %s1870_s23  }
  0x45   :  { %1855 = dma.done.wait [#allocation3], 64  }
  0x46   :  { %1856 = vsyncadd [#allocation3], 4294967232 }
  0x47   :  { %1857 = dma.done.wait [#allocation6], 12544  }
  0x48   :  { %1858 = vsyncadd [#allocation6], 4294954752 }
  0x49   :  { %1859 = dma.done.wait [#allocation9], 3072  }
  0x4a   :  { %1860 = vsyncadd [#allocation9], 4294964224  ;;  %v1871_v0 = vmov 0   ;;  %v80_v1 = vld [vmem:[#allocation5] sm:$0xff]  ;;  %vm118_vm0 = vcmask 1043456   ;;  %v81_v2 = vld [vmem:[#allocation5 + $0x8] sm:$0xff]  ;;  %v84_v60 = vlaneseq }
  0x4b   :  { %163 = vmatprep.mubr.bf16.mxu0 %v1871_v0  ;;  %204 = vmatprep.mubr.bf16.mxu1 %v1871_v0  ;;  %v1346_v3 = vcombine.high %v80_v1, %v80_v1  ;;  %v1345_v4 = vcombine.low %v80_v1, %v80_v1  ;;  %v1348_v5 = vcombine.high %v81_v2, %v81_v2  ;;  %v1593_v7 = vld [vmem:[#allocation7 + $0x4] ss:$12 sps:$4 sm:$0xff]   ;;  %v79_v9 = vld [vmem:[#allocation2] sm:$0xf]  ;;  %vm114_vm1 = vcmask 64512   ;;  %s1874_s30 = smov [#allocation10]  }
  0x4c   :  { %v1347_v6 = vcombine.low %v81_v2, %v81_v2  ;;  %v1591_v11 = vld [vmem:[#allocation7] ss:$12 sps:$4 sm:$0xff]   ;;  %v1596_v12 = vld [vmem:[#allocation7 + $0x1c] ss:$12 sps:$4 sm:$0xff]   ;;  %v1594_v13 = vld [vmem:[#allocation7 + $0x18] ss:$12 sps:$4 sm:$0xff]  }
  0x4d   :  { %1349 = vmatprep.subr.msk.bf16.mxu0 %vm118_vm0, %v1346_v3  ;;  %v120_v8 = vsel %vm118_vm0, %v1345_v4, 0  ;;  %1351 = vmatprep.subr.msk.bf16.mxu1 %vm118_vm0, %v1348_v5  ;;  %v1599_v14 = vld [vmem:[#allocation7 + $0x34] ss:$12 sps:$4 sm:$0xff]   ;;  %v1597_v15 = vld [vmem:[#allocation7 + $0x30] ss:$12 sps:$4 sm:$0xff]   ;;  %v1963_v61 = vshrl.u32 %v84_v60, 7 }
  0x4e   :  { %v126_v10 = vsel %vm118_vm0, %v1347_v6, 0  ;;  %132 = vmatpush1.bf16.msra.mxu0 %v120_v8  ;;  %v1602_v16 = vld [vmem:[#allocation7 + $0x4c] ss:$12 sps:$4 sm:$0xff]   ;;  %v1618_v17 = vld [vmem:[#allocation7 + $0xc8] ss:$12 sps:$4 sm:$0xff]   ;;  %vm1873_vm2 = vmmov 0  }
  0x4f   :  { %173 = vmatpush1.bf16.msra.mxu1 %v126_v10  ;;  %878 = vmatprep.subr.bf16.mxu0 %v1593_v7  ;;  %v1619_v18 = vld [vmem:[#allocation7 + $0x8] ss:$12 sps:$4 sm:$0xff]   ;;  %v1605_v20 = vld [vmem:[#allocation7 + $0x64] ss:$12 sps:$4 sm:$0xff]   ;;  %v1623_v21 = vld [vmem:[#allocation7 + $0xe0] ss:$12 sps:$4 sm:$0xff]  }
  0x50   :  { %v1600_v19 = vld [vmem:[#allocation7 + $0x48] ss:$12 sps:$4 sm:$0xff]   ;;  %1474 = vmatprep.subr.bf16.mxu1 %v1618_v17  ;;  %v1624_v22 = vld [vmem:[#allocation7 + $0x20] ss:$12 sps:$4 sm:$0xff]   ;;  %v1628_v25 = vld [vmem:[#allocation7 + $0xf8] ss:$12 sps:$4 sm:$0xff]  }
  0x51   :  { %1350 = vmatmul.mubr.msk.bf16.vlgmr.msra.gmra.mrb[0].mxu0 %vm114_vm1, %v79_v9  ;;  %v1603_v23 = vld [vmem:[#allocation7 + $0x60] ss:$12 sps:$4 sm:$0xff]   ;;  %v1608_v24 = vld [vmem:[#allocation7 + $0x7c] ss:$12 sps:$4 sm:$0xff]   ;;  %v1629_v26 = vld [vmem:[#allocation7 + $0x38] ss:$12 sps:$4 sm:$0xff]  }
  0x52   :  { %1352 = vmatmul.mubr.msk.bf16.vlgmr.msra.gmra.mrb[0].mxu1 %vm114_vm1, %v79_v9  ;;  %879 = vmatpush1.bf16.msra.mxu0 %v1591_v11  ;;  %v1606_v27 = vld [vmem:[#allocation7 + $0x78] ss:$12 sps:$4 sm:$0xff]   ;;  %v1611_v28 = vld [vmem:[#allocation7 + $0x94] ss:$12 sps:$4 sm:$0xff]   ;;  %v1633_v29 = vld [vmem:[#allocation7 + $0x110] ss:$12 sps:$4 sm:$0xff]  }
  0x53   :  { %880 = vmatprep.subr.bf16.mxu0 %v1596_v12  ;;  %1475 = vmatpush3.bf16.msra.mxu1 %v1619_v18  ;;  %v1634_v30 = vld [vmem:[#allocation7 + $0x50] ss:$12 sps:$4 sm:$0xff]   ;;  %v1638_v31 = vld [vmem:[#allocation7 + $0x128] ss:$12 sps:$4 sm:$0xff]   ;;  %v1614_v33 = vld [vmem:[#allocation7 + $0xac] ss:$12 sps:$4 sm:$0xff]  }
  0x54   :  { %1476 = vmatprep.subr.bf16.mxu1 %v1623_v21  ;;  %v1609_v32 = vld [vmem:[#allocation7 + $0x90] ss:$12 sps:$4 sm:$0xff]   ;;  %v1639_v34 = vld [vmem:[#allocation7 + $0x68] ss:$12 sps:$4 sm:$0xff]   ;;  %v1643_v36 = vld [vmem:[#allocation7 + $0x140] ss:$12 sps:$4 sm:$0xff]  }
  0x55   :  { %v1612_v35 = vld [vmem:[#allocation7 + $0xa8] ss:$12 sps:$4 sm:$0xff]   ;;  %v1617_v37 = vld [vmem:[#allocation7 + $0xc4] ss:$12 sps:$4 sm:$0xff]   ;;  %v1644_v38 = vld [vmem:[#allocation7 + $0x80] ss:$12 sps:$4 sm:$0xff]  }
  0x56   :  { %881 = vmatpush1.bf16.msra.mxu0 %v1594_v13  ;;  %v1615_v39 = vld [vmem:[#allocation7 + $0xc0] ss:$12 sps:$4 sm:$0xff]   ;;  %v1622_v40 = vld [vmem:[#allocation7 + $0xdc] ss:$12 sps:$4 sm:$0xff]   ;;  %v1620_v41 = vld [vmem:[#allocation7 + $0xd8] ss:$12 sps:$4 sm:$0xff]  }
  0x57   :  { %882 = vmatprep.subr.bf16.mxu0 %v1599_v14  ;;  %1477 = vmatpush3.bf16.msra.mxu1 %v1624_v22  ;;  %v1627_v42 = vld [vmem:[#allocation7 + $0xf4] ss:$12 sps:$4 sm:$0xff]   ;;  %v1625_v43 = vld [vmem:[#allocation7 + $0xf0] ss:$12 sps:$4 sm:$0xff]   ;;  %v1632_v44 = vld [vmem:[#allocation7 + $0x10c] ss:$12 sps:$4 sm:$0xff]  }
  0x58   :  { %1478 = vmatprep.subr.bf16.mxu1 %v1628_v25  ;;  %v1630_v45 = vld [vmem:[#allocation7 + $0x108] ss:$12 sps:$4 sm:$0xff]   ;;  %v1637_v46 = vld [vmem:[#allocation7 + $0x124] ss:$12 sps:$4 sm:$0xff]   ;;  %v1635_v47 = vld [vmem:[#allocation7 + $0x120] ss:$12 sps:$4 sm:$0xff]  }
  0x59   :  { %v1642_v48 = vld [vmem:[#allocation7 + $0x13c] ss:$12 sps:$4 sm:$0xff]   ;;  %v1640_v49 = vld [vmem:[#allocation7 + $0x138] ss:$12 sps:$4 sm:$0xff]   ;;  %v1647_v50 = vld [vmem:[#allocation7 + $0x154] ss:$12 sps:$4 sm:$0xff]  }
  0x5a   :  { %883 = vmatpush1.bf16.msra.mxu0 %v1597_v15  ;;  %v1648_v51 = vld [vmem:[#allocation7 + $0x158] ss:$12 sps:$4 sm:$0xff]   ;;  %v1645_v52 = vld [vmem:[#allocation7 + $0x150] ss:$12 sps:$4 sm:$0xff]   ;;  %v1650_v56 = vld [vmem:[#allocation7 + $0x168] ss:$12 sps:$4 sm:$0xff]  }
  0x5b   :  { %884 = vmatprep.subr.bf16.mxu0 %v1602_v16  ;;  %1479 = vmatpush3.bf16.msra.mxu1 %v1629_v26  ;;  %v1649_v53 = vld [vmem:[#allocation7 + $0x98] ss:$12 sps:$4 sm:$0xff]   ;;  %v1653_v55 = vld [vmem:[#allocation7 + $0x170] ss:$12 sps:$4 sm:$0xff]   ;;  %v1658_v59 = vld [vmem:[#allocation7 + $0x248] ss:$12 sps:$4 sm:$0xff]  }
  0x5c   :  { %1480 = vmatprep.subr.bf16.mxu1 %v1633_v29  ;;  %v1652_v54 = vld [vmem:[#allocation7 + $0x16c] ss:$12 sps:$4 sm:$0xff]   ;;  %v1654_v57 = vld [vmem:[#allocation7 + $0xb0] ss:$12 sps:$4 sm:$0xff]   ;;  %v86_v62 = vsub.s32 0, %v1963_v61  ;;  %v90_v0 = vsub.s32 1, %v1963_v61 }
  0x5d   :  { %v1657_v58 = vld [vmem:[#allocation7 + $0x184] ss:$12 sps:$4 sm:$0xff]   ;;  %v1969_v63 = vld [vmem:[%s2013_s2] sm:$0xf]  ;;  %v98_v1 = vsub.s32 3, %v1963_v61  ;;  %s1334_s8 = sshll.u32 %s1874_s30, 4  ;;  %s1335_s8 = int_to_ptr.vmem [resolvable:$true] %s1334_s8 }
  0x5e   :  { %885 = vmatpush1.bf16.msra.mxu0 %v1600_v19  ;;  %v87_v2 = vrot.slane %v1969_v63, %v86_v62  ;;  %v91_v3 = vrot.slane %v1969_v63, %v90_v0  ;;  %v1659_v21 = vld [vmem:[#allocation7 + $0x188] ss:$12 sps:$4 sm:$0xff]   ;;  %v1660_v26 = vld [vmem:[#allocation7 + $0x198] ss:$12 sps:$4 sm:$0xff]   ;;  %s1833_s9 = scalar_lea.vmem %s1335_s8, 64  ;;  %p1838_p5 = scmp.lt.s32.totalorder %s1335_s8, %s1335_s8 }
  0x5f   :  { %886 = vmatprep.subr.bf16.mxu0 %v1605_v20  ;;  %1481 = vmatpush3.bf16.msra.mxu1 %v1634_v30  ;;  %v99_v4 = vrot.slane %v1969_v63, %v98_v1  ;;  %v1655_v20 = vld [vmem:[#allocation7 + $0x180] ss:$12 sps:$4 sm:$0xff]   ;;  %v1668_v29 = vld [vmem:[#allocation7 + $0x278] ss:$12 sps:$4 sm:$0xff]   ;;  %v1665_v30 = vld [vmem:[#allocation7 + $0x1b0] ss:$12 sps:$4 sm:$0xff]   ;;  %p1834_p4 = scmp.ne.s32.totalorder %s1335_s8, %s1833_s9  ;;  %p1839_p6 = scmp.lt.s32.totalorder %s1833_s9, %s1833_s9 }
  0x60   :  { %1482 = vmatprep.subr.bf16.mxu1 %v1638_v31  ;;  %v1669_v31 = vld [vmem:[#allocation7 + $0x1b8] ss:$12 sps:$4 sm:$0xff]   ;;  %v1701_v1 = vld [vmem:[#allocation7 + $0x270] ss:$12 sps:$4 sm:$0xff]  }
  0x61   :  { %v1698_v60 = vld [vmem:[#allocation7 + $0x258] ss:$12 sps:$4 sm:$0xff]   ;;  %p1840_p7 = por %p1839_p6, %p1838_p5 }
  0x62   :  { %887 = vmatpush1.bf16.msra.mxu0 %v1603_v23  ;;  %v1662_v23 = vld [vmem:[#allocation7 + $0x19c] ss:$12 sps:$4 sm:$0xff]  }
  0x63   :  { %888 = vmatprep.subr.bf16.mxu0 %v1608_v24  ;;  %1483 = vmatpush3.bf16.msra.mxu1 %v1639_v34  ;;  %v1663_v24 = vld [vmem:[#allocation7 + $0x260] ss:$12 sps:$4 sm:$0xff]   ;;  %v1670_v34 = vld [vmem:[#allocation7 + $0x1c8] ss:$12 sps:$4 sm:$0xff]   ;;  %p1841_p8 = pnand %p1840_p7, %p1834_p4 }
  0x64   :  { %1484 = vmatprep.subr.bf16.mxu1 %v1643_v36  ;;  %v1677_v36 = vld [vmem:[#allocation7 + $0x1e4] ss:$12 sps:$4 sm:$0xff]  }
  0x66   :  { %889 = vmatpush1.bf16.msra.mxu0 %v1606_v27  ;;  %v1664_v27 = vld [vmem:[#allocation7 + $0x1a0] ss:$12 sps:$4 sm:$0xff]  }
  0x67   :  { %890 = vmatprep.subr.bf16.mxu0 %v1611_v28  ;;  %1485 = vmatpush3.bf16.msra.mxu1 %v1644_v38  ;;  %v1667_v28 = vld [vmem:[#allocation7 + $0x1b4] ss:$12 sps:$4 sm:$0xff]   ;;  %v94_v38 = vsub.s32 2, %v1963_v61 }
  0x68   :  { %1486 = vmatprep.subr.bf16.mxu1 %v1648_v51  ;;  %v1692_v51 = vld [vmem:[#allocation7 + $0x22c] ss:$12 sps:$4 sm:$0xff]   ;;  %v1737_v61 = vld [vmem:[#allocation8 + $0x90] sm:$0xff]  }
  0x6a   :  { %891 = vmatpush1.bf16.msra.mxu0 %v1609_v32  ;;  %v1672_v32 = vld [vmem:[#allocation7 + $0x1cc] ss:$12 sps:$4 sm:$0xff]  }
  0x6b   :  { %892 = vmatprep.subr.bf16.mxu0 %v1614_v33  ;;  %1487 = vmatpush3.bf16.msra.mxu1 %v1649_v53  ;;  %v1673_v33 = vld [vmem:[#allocation7 + $0x290] ss:$12 sps:$4 sm:$0xff]  }
  0x6c   :  { %1488 = vmatprep.subr.bf16.mxu1 %v1653_v55  ;;  %v1694_v55 = vld [vmem:[#allocation7 + $0x230] ss:$12 sps:$4 sm:$0xff]  }
  0x6e   :  { %893 = vmatpush1.bf16.msra.mxu0 %v1612_v35  ;;  %v1674_v35 = vld [vmem:[#allocation7 + $0x1d0] ss:$12 sps:$4 sm:$0xff]  }
  0x6f   :  { %894 = vmatprep.subr.bf16.mxu0 %v1617_v37  ;;  %1489 = vmatpush3.bf16.msra.mxu1 %v1654_v57  ;;  %v1678_v37 = vld [vmem:[#allocation7 + $0x2a8] ss:$12 sps:$4 sm:$0xff]  }
  0x70   :  { %1496 = vmatprep.subr.bf16.mxu1 %v1658_v59  ;;  %v1700_v59 = vld [vmem:[#allocation7 + $0x25c] ss:$12 sps:$4 sm:$0xff]  }
  0x72   :  { %895 = vmatpush1.bf16.msra.mxu0 %v1615_v39  ;;  %v1675_v39 = vld [vmem:[#allocation7 + $0x1e0] ss:$12 sps:$4 sm:$0xff]  }
  0x73   :  { %896 = vmatprep.subr.bf16.mxu0 %v1622_v40  ;;  %v1679_v40 = vld [vmem:[#allocation7 + $0x1e8] ss:$12 sps:$4 sm:$0xff]  }
  0x76   :  { %897 = vmatpush1.bf16.msra.mxu0 %v1620_v41  ;;  %v1682_v41 = vld [vmem:[#allocation7 + $0x1fc] ss:$12 sps:$4 sm:$0xff]  }
  0x77   :  { %898 = vmatprep.subr.bf16.mxu0 %v1627_v42  ;;  %v1683_v42 = vld [vmem:[#allocation7 + $0x2c0] ss:$12 sps:$4 sm:$0xff]  }
  0x7a   :  { %899 = vmatpush1.bf16.msra.mxu0 %v1625_v43  ;;  %v95_v43 = vrot.slane %v1969_v63, %v94_v38  ;;  %v1703_v63 = vld [vmem:[#allocation7 + $0x274] ss:$12 sps:$4 sm:$0xff]  }
  0x7b   :  { %900 = vmatprep.subr.bf16.mxu0 %v1632_v44  ;;  %v1680_v44 = vld [vmem:[#allocation7 + $0x1f8] ss:$12 sps:$4 sm:$0xff]  }
  0x7e   :  { %901 = vmatpush1.bf16.msra.mxu0 %v1630_v45  ;;  %v1684_v45 = vld [vmem:[#allocation7 + $0x200] ss:$12 sps:$4 sm:$0xff]  }
  0x7f   :  { %902 = vmatprep.subr.bf16.mxu0 %v1637_v46  ;;  %v1687_v46 = vld [vmem:[#allocation7 + $0x214] ss:$12 sps:$4 sm:$0xff]  }
  0x82   :  { %903 = vmatpush1.bf16.msra.mxu0 %v1635_v47  ;;  %v1688_v47 = vld [vmem:[#allocation7 + $0x2d8] ss:$12 sps:$4 sm:$0xff]  }
  0x83   :  { %904 = vmatprep.subr.bf16.mxu0 %v1642_v48 }
  0x86   :  { %905 = vmatpush1.bf16.msra.mxu0 %v1640_v49  ;;  %v1685_v49 = vld [vmem:[#allocation7 + $0x210] ss:$12 sps:$4 sm:$0xff]  }
  0x87   :  { %906 = vmatprep.subr.bf16.mxu0 %v1647_v50  ;;  %v1689_v50 = vld [vmem:[#allocation7 + $0x218] ss:$12 sps:$4 sm:$0xff]  }
  0x8a   :  { %907 = vmatpush1.bf16.msra.mxu0 %v1645_v52  ;;  %v1693_v52 = vld [vmem:[#allocation7 + $0x2f0] ss:$12 sps:$4 sm:$0xff]  }
  0x8b   :  { %908 = vmatprep.subr.bf16.mxu0 %v1652_v54  ;;  %v1690_v54 = vld [vmem:[#allocation7 + $0x228] ss:$12 sps:$4 sm:$0xff]  }
  0x8e   :  { %909 = vmatpush1.bf16.msra.mxu0 %v1650_v56  ;;  %v1697_v56 = vld [vmem:[#allocation7 + $0x244] ss:$12 sps:$4 sm:$0xff]  }
  0x8f   :  { %919 = vmatprep.subr.bf16.mxu0 %v1657_v58  ;;  %v1695_v58 = vld [vmem:[#allocation7 + $0x240] ss:$12 sps:$4 sm:$0xff]  }
 0x124   :  { %v165_v5 = vpop.f32.mrb[0].mxu0 }
 0x125   :  { %v1980_v6 = vpop.f32.mrb[0].mxu1  ;;  %v166_v7 = vadd.f32 %v165_v5, %v87_v2  ;;  %v167_v8 = vpop.f32.mrb[1].mxu0  ;;  %v1706_v2 = vld [vmem:[#allocation7 + $0x28c] ss:$12 sps:$4 sm:$0xff]  }
 0x126   :  { %v208_v9 = vpop.f32.mrb[1].mxu1  ;;  %v168_v10 = vadd.f32 %v167_v8, %v91_v3  ;;  %v169_v11 = vpop.f32.mrb[2].mxu0  ;;  %v207_v48 = vadd.f32 %v1980_v6, %v95_v43  ;;  %v1704_v3 = vld [vmem:[#allocation7 + $0x288] ss:$12 sps:$4 sm:$0xff]   ;;  %v1707_v5 = vld [vmem:[#allocation7 + $0x2a0] ss:$12 sps:$4 sm:$0xff]  }
 0x127   :  { %v209_v12 = vadd.f32 %v208_v9, %v99_v4  ;;  %v210_v13 = vpop.f32.mrb[2].mxu1  ;;  %v213_v14 = vmax.f32 %v166_v7, 0.0  ;;  %v170_v15 = vpop.f32.mrb[3].mxu0  ;;  %v1709_v4 = vld [vmem:[#allocation7 + $0x2a4] ss:$12 sps:$4 sm:$0xff]  }
 0x128   :  { %v211_v16 = vpop.f32.mrb[3].mxu1  ;;  %v214_v17 = vmax.f32 %v168_v10, 0.0  ;;  %v215_v53 = vmax.f32 %v207_v48, 0.0  ;;  %v1712_v6 = vld [vmem:[#allocation7 + $0x2bc] ss:$12 sps:$4 sm:$0xff]   ;;  %v1720_v13 = vld [vmem:[#allocation8] sm:$0xff]  }
 0x129   :  { %v216_v18 = vmax.f32 %v209_v12, 0.0  ;;  %v217_v22 = vpack.c.bf16 %v213_v14, %v213_v14  ;;  %v1710_v7 = vld [vmem:[#allocation7 + $0x2b8] ss:$12 sps:$4 sm:$0xff]   ;;  %v1715_v8 = vld [vmem:[#allocation7 + $0x2d4] ss:$12 sps:$4 sm:$0xff]   ;;  %v1721_v14 = vld [vmem:[#allocation8 + $0x48] sm:$0xff]  }
 0x12a   :  { %v218_v19 = vpack.c.bf16 %v214_v17, %v214_v17  ;;  %v219_v57 = vpack.c.bf16 %v215_v53, %v215_v53  ;;  %v1713_v9 = vld [vmem:[#allocation7 + $0x2d0] ss:$12 sps:$4 sm:$0xff]   ;;  %v1718_v10 = vld [vmem:[#allocation7 + $0x2ec] ss:$12 sps:$4 sm:$0xff]   ;;  %v1716_v11 = vld [vmem:[#allocation7 + $0x2e8] ss:$12 sps:$4 sm:$0xff]  }
 0x12b   :  { %v220_v25 = vpack.c.bf16 %v216_v18, %v216_v18  ;;  %v1719_v12 = vld [vmem:[#allocation8 + $0x40] sm:$0xff]   ;;  %v1722_v15 = vld [vmem:[#allocation8 + $0x8] sm:$0xff]   ;;  %v1723_v16 = vld [vmem:[#allocation8 + $0x50] sm:$0xff]  }
 0x12c   :  { %910 = vmatprep.mubr.bf16.mxu0 %v218_v19  ;;  %992 = vmatprep.mubr.bf16.mxu1 %v218_v19  ;;  %v1724_v17 = vld [vmem:[#allocation8 + $0x10] sm:$0xff]   ;;  %v1725_v18 = vld [vmem:[#allocation8 + $0x58] sm:$0xff]  }
 0x12d   :  { %911 = vmatmul.mubr.bf16.vlgmr.msra.gmra.mrb[4].mxu0 %v217_v22  ;;  %993 = vmatmul.mubr.bf16.vlgmr.msra.gmra.mrb[4].mxu1 %v217_v22  ;;  %v1726_v19 = vld [vmem:[#allocation8 + $0x18] sm:$0xff]   ;;  %v1729_v22 = vld [vmem:[#allocation8 + $0x68] sm:$0xff]  }
 0x12e   :  { %920 = vmatpush1.bf16.msra.mxu0 %v1655_v20  ;;  %1497 = vmatpush3.bf16.msra.mxu1 %v1659_v21  ;;  %v1727_v20 = vld [vmem:[#allocation8 + $0x60] sm:$0xff]  }
 0x12f   :  { %921 = vmatprep.subr.bf16.mxu0 %v1662_v23  ;;  %1498 = vmatprep.subr.bf16.mxu1 %v1663_v24  ;;  %v1728_v21 = vld [vmem:[#allocation8 + $0x20] sm:$0xff]   ;;  %v1730_v23 = vld [vmem:[#allocation8 + $0x28] sm:$0xff]   ;;  %v1731_v24 = vld [vmem:[#allocation8 + $0x70] sm:$0xff]  }
 0x130   :  { %1032 = vmatprep.mubr.bf16.mxu1 %v220_v25  ;;  %951 = vmatprep.mubr.bf16.mxu0 %v220_v25  ;;  %v1732_v25 = vld [vmem:[#allocation8 + $0x30] sm:$0xff]  }
 0x132   :  { %922 = vmatpush1.bf16.msra.mxu0 %v1660_v26  ;;  %1499 = vmatpush3.bf16.msra.mxu1 %v1664_v27  ;;  %v1733_v26 = vld [vmem:[#allocation8 + $0x78] sm:$0xff]  }
 0x133   :  { %923 = vmatprep.subr.bf16.mxu0 %v1667_v28  ;;  %1500 = vmatprep.subr.bf16.mxu1 %v1668_v29  ;;  %v1734_v27 = vld [vmem:[#allocation8 + $0x38] sm:$0xff]   ;;  %v1872_v28 = vmov 0.0  }
 0x136   :  { %924 = vmatpush1.bf16.msra.mxu0 %v1665_v30  ;;  %1501 = vmatpush3.bf16.msra.mxu1 %v1669_v31 }
 0x137   :  { %925 = vmatprep.subr.bf16.mxu0 %v1672_v32  ;;  %1502 = vmatprep.subr.bf16.mxu1 %v1673_v33 }
 0x13a   :  { %926 = vmatpush1.bf16.msra.mxu0 %v1670_v34  ;;  %1503 = vmatpush3.bf16.msra.mxu1 %v1674_v35  ;;  %v349_v34 = vld [vmem:[%s2015_s4] sm:$0x7] }
 0x13b   :  { %927 = vmatprep.subr.bf16.mxu0 %v1677_v36  ;;  %1504 = vmatprep.subr.bf16.mxu1 %v1678_v37  ;;  %v362_v35 = vrot.slane %v349_v34, %v94_v38 }
 0x13e   :  { %928 = vmatpush1.bf16.msra.mxu0 %v1675_v39  ;;  %1505 = vmatpush3.bf16.msra.mxu1 %v1679_v40 }
 0x13f   :  { %929 = vmatprep.subr.bf16.mxu0 %v1682_v41  ;;  %1506 = vmatprep.subr.bf16.mxu1 %v1683_v42 }
 0x142   :  { %930 = vmatpush1.bf16.msra.mxu0 %v1680_v44  ;;  %1507 = vmatpush3.bf16.msra.mxu1 %v1684_v45  ;;  %v354_v44 = vrot.slane %v349_v34, %v86_v62  ;;  %v358_v45 = vrot.slane %v349_v34, %v90_v0  ;;  %v1738_v62 = vld [vmem:[#allocation8 + $0x98] sm:$0xff]   ;;  %v1739_v0 = vld [vmem:[#allocation8 + $0xa0] sm:$0xff]  }
 0x143   :  { %931 = vmatprep.subr.bf16.mxu0 %v1687_v46  ;;  %1508 = vmatprep.subr.bf16.mxu1 %v1688_v47 }
 0x146   :  { %932 = vmatpush1.bf16.msra.mxu0 %v1685_v49  ;;  %1509 = vmatpush3.bf16.msra.mxu1 %v1689_v50 }
 0x147   :  { %933 = vmatprep.subr.bf16.mxu0 %v1692_v51  ;;  %1510 = vmatprep.subr.bf16.mxu1 %v1693_v52 }
 0x14a   :  { %934 = vmatpush1.bf16.msra.mxu0 %v1690_v54  ;;  %1511 = vmatpush3.bf16.msra.mxu1 %v1694_v55  ;;  %v1735_v54 = vld [vmem:[#allocation8 + $0x80] sm:$0xff]  }
 0x14b   :  { %935 = vmatprep.subr.bf16.mxu0 %v1697_v56  ;;  %1518 = vmatprep.subr.bf16.mxu1 %v1719_v12  ;;  %v1736_v56 = vld [vmem:[#allocation8 + $0x88] sm:$0xff]  }
 0x14d   :  { %1033 = vmatmul.mubr.bf16.vlgmr.msra.gmra.mrb[8].mxu1 %v219_v57 }
 0x14e   :  { %936 = vmatpush1.bf16.msra.mxu0 %v1695_v58  ;;  %1519 = vmatpush3.bf16.msra.mxu1 %v1720_v13  ;;  %v1741_v58 = vld [vmem:[#allocation8 + $0xb0] sm:$0xff]  }
 0x14f   :  { %937 = vmatprep.subr.bf16.mxu0 %v1700_v59  ;;  %1520 = vmatprep.subr.bf16.mxu1 %v1721_v14  ;;  %v1742_v59 = vld [vmem:[#allocation8 + $0xb8] sm:$0xff]  }
 0x152   :  { %938 = vmatpush1.bf16.msra.mxu0 %v1698_v60  ;;  %1521 = vmatpush3.bf16.msra.mxu1 %v1722_v15 }
 0x153   :  { %939 = vmatprep.subr.bf16.mxu0 %v1703_v63  ;;  %1522 = vmatprep.subr.bf16.mxu1 %v1723_v16 }
 0x156   :  { %940 = vmatpush1.bf16.msra.mxu0 %v1701_v1  ;;  %1523 = vmatpush3.bf16.msra.mxu1 %v1724_v17 }
 0x157   :  { %941 = vmatprep.subr.bf16.mxu0 %v1706_v2  ;;  %1524 = vmatprep.subr.bf16.mxu1 %v1725_v18 }
 0x15a   :  { %942 = vmatpush1.bf16.msra.mxu0 %v1704_v3  ;;  %1525 = vmatpush3.bf16.msra.mxu1 %v1726_v19 }
 0x15b   :  { %943 = vmatprep.subr.bf16.mxu0 %v1709_v4  ;;  %1526 = vmatprep.subr.bf16.mxu1 %v1727_v20 }
 0x15e   :  { %944 = vmatpush1.bf16.msra.mxu0 %v1707_v5  ;;  %1527 = vmatpush3.bf16.msra.mxu1 %v1728_v21 }
 0x15f   :  { %945 = vmatprep.subr.bf16.mxu0 %v1712_v6  ;;  %1528 = vmatprep.subr.bf16.mxu1 %v1729_v22  ;;  %v1449_v6 = vld [vmem:[%s2017_s6] ss:$0 sm:$0xff] }
 0x162   :  { %946 = vmatpush1.bf16.msra.mxu0 %v1710_v7  ;;  %1529 = vmatpush3.bf16.msra.mxu1 %v1730_v23 }
 0x163   :  { %947 = vmatprep.subr.bf16.mxu0 %v1715_v8  ;;  %1530 = vmatprep.subr.bf16.mxu1 %v1731_v24 }
 0x166   :  { %948 = vmatpush1.bf16.msra.mxu0 %v1713_v9  ;;  %1531 = vmatpush3.bf16.msra.mxu1 %v1732_v25 }
 0x167   :  { %949 = vmatprep.subr.bf16.mxu0 %v1718_v10  ;;  %1532 = vmatprep.subr.bf16.mxu1 %v1733_v26 }
 0x16a   :  { %950 = vmatpush1.bf16.msra.mxu0 %v1716_v11  ;;  %1533 = vmatpush3.bf16.msra.mxu1 %v1734_v27 }
 0x16b   :  { %1549 = vmatprep.subr.bf16.mxu1 %v1872_v28 }
 0x16d   :  { %952 = vmatmul.mubr.bf16.vlgmr.msra.gmra.mrb[4].mxu0 %v219_v57  ;;  %v1740_v57 = vld [vmem:[#allocation8 + $0xa8] sm:$0xff]  }
 0x200   :  { %v1490_v29 = vpop.f32.mrb[4].mxu1 }
 0x201   :  { %v1491_v30 = vpop.f32.mrb[5].mxu1 }
 0x202   :  { %v1492_v31 = vadd.f32 %v1491_v30, %v1490_v29  ;;  %v1493_v32 = vpop.f32.mrb[6].mxu1 }
 0x203   :  { %v1494_v33 = vpop.f32.mrb[7].mxu1 }
 0x204   :  { %v995_v39 = vadd.f32 %v1492_v31, %v362_v35 }
 0x220   :  { %v1512_v36 = vpop.f32.mrb[8].mxu1 }
 0x221   :  { %v1513_v37 = vpop.f32.mrb[9].mxu1 }
 0x222   :  { %v1514_v40 = vadd.f32 %v1513_v37, %v1512_v36  ;;  %v1515_v41 = vpop.f32.mrb[10].mxu1 }
 0x223   :  { %v1516_v42 = vpop.f32.mrb[11].mxu1 }
 0x224   :  { %v1035_v43 = vadd.f32 %v1514_v40, %v995_v39 }
 0x226   :  { %v1042_v60 = vmax.f32 %v1035_v43, 0.0 }
 0x228   :  { %v1045_v63 = vpack.c.bf16 %v1042_v60, %v1042_v60 }
 0x240   :  { %v953_v46 = vpop.f32.mrb[4].mxu0 }
 0x241   :  { %v1569_v47 = vadd.f32 %v953_v46, %v354_v44  ;;  %v955_v48 = vpop.f32.mrb[5].mxu0 }
 0x242   :  { %v1570_v49 = vadd.f32 %v955_v48, %v358_v45  ;;  %v957_v50 = vpop.f32.mrb[6].mxu0 }
 0x243   :  { %v1040_v51 = vmax.f32 %v1569_v47, 0.0  ;;  %v958_v38 = vpop.f32.mrb[7].mxu0 }
 0x244   :  { %v1041_v52 = vmax.f32 %v1570_v49, 0.0 }
 0x245   :  { %v1043_v55 = vpack.c.bf16 %v1040_v51, %v1040_v51 }
 0x246   :  { %v1044_v53 = vpack.c.bf16 %v1041_v52, %v1041_v52 }
 0x248   :  { %1277 = vmatprep.mubr.bf16.mxu1 %v1044_v53 }
 0x249   :  { %1278 = vmatmul.mubr.bf16.vlgmr.msra.gmra.mrb[12].mxu1 %v1043_v55 }
 0x24a   :  { %1550 = vmatpush3.bf16.msra.mxu1 %v1735_v54  ;;  %1565 = vmatprep.mubr.msk.bf16.mxu1 %vm1873_vm2, %v1872_v28 }
 0x24b   :  { %1551 = vmatprep.subr.bf16.mxu1 %v1872_v28 }
 0x24e   :  { %1552 = vmatpush3.bf16.msra.mxu1 %v1736_v56 }
 0x24f   :  { %1553 = vmatprep.subr.bf16.mxu1 %v1872_v28 }
 0x252   :  { %1554 = vmatpush3.bf16.msra.mxu1 %v1737_v61 }
 0x253   :  { %1555 = vmatprep.subr.bf16.mxu1 %v1872_v28 }
 0x256   :  { %1556 = vmatpush3.bf16.msra.mxu1 %v1738_v62 }
 0x257   :  { %1557 = vmatprep.subr.bf16.mxu1 %v1872_v28 }
 0x25a   :  { %1558 = vmatpush3.bf16.msra.mxu1 %v1739_v0 }
 0x25b   :  { %1559 = vmatprep.subr.bf16.mxu1 %v1872_v28 }
 0x25e   :  { %1560 = vmatpush3.bf16.msra.mxu1 %v1740_v57 }
 0x25f   :  { %1561 = vmatprep.subr.bf16.mxu1 %v1872_v28 }
 0x262   :  { %1562 = vmatpush3.bf16.msra.mxu1 %v1741_v58 }
 0x263   :  { %1563 = vmatprep.subr.bf16.mxu1 %v1872_v28 }
 0x266   :  { %1564 = vmatpush3.bf16.msra.mxu1 %v1742_v59 }
 0x269   :  { %1566 = vmatmul.mubr.bf16.vlgmr.msra.gmra.mrb[16].mxu1 %v1045_v63 }
 0x31c   :  { %v1534_v1 = vpop.f32.mrb[12].mxu1 }
 0x31d   :  { %v1535_v2 = vpop.f32.mrb[13].mxu1 }
 0x31e   :  { %v1536_v3 = vadd.f32 %v1535_v2, %v1534_v1  ;;  %v1537_v4 = vpop.f32.mrb[14].mxu1 }
 0x31f   :  { %v1538_v5 = vpop.f32.mrb[15].mxu1 }
 0x320   :  { %v1280_v7 = vadd.f32 %v1536_v3, %v1449_v6 }
 0x33c   :  { %v1319_v8 = vpop.f32.mrb[16].mxu1 }
 0x33d   :  { %v1320_v9 = vadd.f32 %v1319_v8, %v1280_v7  ;;  %v1567_v10 = vpop.f32.mrb[17].mxu1 }
 0x33e   :  { %v1322_v11 = vpop.f32.mrb[18].mxu1 }
 0x33f   :  { %1743 = vtanh.f32 %v1320_v9  ;;  %v1568_v12 = vpop.f32.mrb[19].mxu1 }
 0x349   :  { %v1744_v13 = vpop.eup %1743 }
 0x34a   :  { %v1326_v14 = vpack.c.bf16 %v1744_v13, %v1744_v13 }
 0x34c   :  { %1327 = vst [vmem:[#allocation10] sm:$0xf] %v1326_v14 }
 0x34d   :  { %1844 = shalt.err (!%p1841_p8)
}
 0x34e   :  { %s1845_s11 = scalar_lea.hbm %s2018_s7, 64 }
 0x34f   :  { %p1846_p9 = scmp.ne.s32.totalorder %s2018_s7, %s1845_s11  ;;  %p1849_p10 = scmp.lt.u32.totalorder %s1845_s11, %s2018_s7 }
 0x351   :  { %p1851_p11 = pnand %p1849_p10, %p1846_p9 }
 0x353   :  { %1854 = shalt.err (!%p1851_p11)
}
 0x354   :  { %1337 = dma.vmem_to_hbm [thread:$0]  %s1335_s8, 64, %s2018_s7, [#allocation4]  }
 0x355   :  { %1861 = dma.done.wait [#allocation4], 64  }
 0x356   :  { %1862 = vsyncadd [#allocation4], 4294967232 }
 0x357   :  { %1341 = vsyncpa [#allocation3], 1 }
 0x358   :  { %1342 = vsyncpa [#allocation6], 1 }
 0x359   :  { %1343 = vsyncpa [#allocation9], 1 }
 0x35a   :  { %1344 = vsyncpa [#allocation4], 1 }

</bundles_post_ra>
